<compile_context>
chip_gen: v7x
topology: tpu7x:2x2x1
jax: 0.10.0
libtpu: 0.0.40
codegen_flags: <defaults>
</compile_context>

<pallas_src>
import jax
import jax.numpy as jnp
from jax.experimental import pallas as pl
from jax.experimental.pallas import tpu as pltpu


def _round_up(v, m):
    return ((v + m - 1) // m) * m


# ----------------------------------------------------------------------------
# Kernel
# ----------------------------------------------------------------------------
def _ffn_kernel(x_ref, w1_ref, b1_ref, w2_ref, b2_ref, o_ref, acc_ref):
    # x_ref  : (tm, d_model_p)    token tile (input dtype)
    # w1_ref : (d_model_p, tk)    W1 column block (compute dtype, e.g. bf16)
    # b1_ref : (1, tk)            f32
    # w2_ref : (tk, d_model_p)    W2 row block (compute dtype)
    # b2_ref : (1, d_model_p)     f32
    # o_ref  : (tm, d_model_p)
    # acc_ref: (tm, d_model_p)    f32 accumulator, persists across the d_ff axis
    k = pl.program_id(1)

    @pl.when(k == 0)
    def _init():
        # Fold b2 into the accumulator init (broadcast over rows).
        acc_ref[...] = jnp.broadcast_to(
            b2_ref[...].astype(jnp.float32), acc_ref.shape)

    h = jnp.dot(x_ref[...].astype(w1_ref.dtype), w1_ref[...],
                preferred_element_type=jnp.float32)
    h = jnp.maximum(h + b1_ref[...].astype(jnp.float32), 0.0)   # ReLU (f32)
    # dropout: identity (eval mode)
    acc_ref[...] += jnp.dot(h.astype(w2_ref.dtype), w2_ref[...],
                            preferred_element_type=jnp.float32)

    @pl.when(k == pl.num_programs(1) - 1)
    def _finalize():
        o_ref[...] = acc_ref[...].astype(o_ref.dtype)


# ----------------------------------------------------------------------------
# Device-aware tile / VMEM sizing
# ----------------------------------------------------------------------------
def _vmem_budget_bytes():
    try:
        cap = int(pltpu.get_tpu_info().vmem_capacity_bytes)
    except Exception:
        cap = 64 * 1024 * 1024          # conservative fallback (v7x per-TC)
    # Leave headroom for compiler-internal scratch; cap well below 128 MiB.
    return min(cap * 3 // 4, 112 * 1024 * 1024)


def _vmem_estimate(tm, tk, d_model_p, xbytes, wbytes):
    est = 2 * tm * d_model_p * xbytes          # x tile (double buffered)
    est += 2 * d_model_p * tk * wbytes         # W1 block (double buffered)
    est += 2 * tk * d_model_p * wbytes         # W2 block (double buffered)
    est += 2 * (tk + d_model_p) * 4            # b1 / b2 blocks
    est += 2 * tm * d_model_p * xbytes         # output tile
    est += tm * d_model_p * 4                  # f32 accumulator scratch
    est += tm * tk * 6                         # in-kernel h temporaries (f32+bf16)
    return est


def _choose_tiles(N, d_model_p, d_ff_p, xbytes, wbytes, budget):
    # Bigger row tiles on 128-MiB parts (v5e/v6e), smaller on v7x (64 MiB).
    tm_target = 512 if budget >= 80 * 1024 * 1024 else 256
    tm = min(tm_target, _round_up(N, 8))
    # Megacore: keep >= 2 row tiles on the "parallel" axis when possible.
    if _round_up(N, tm) // tm < 2 and tm > 8:
        tm = _round_up(max(tm // 2, 8), 8)
    # k-tile candidates: divisors of d_ff_p that are multiples of 128, largest
    # first. tk == d_ff_p => weights fully VMEM resident, DMA'd exactly once.
    m = d_ff_p // 128
    tks = [128 * d for d in sorted((d for d in range(1, m + 1) if m % d == 0),
                                   reverse=True)]
    while True:
        for tk in tks:
            if _vmem_estimate(tm, tk, d_model_p, xbytes, wbytes) <= budget:
                return tm, tk
        if tm <= 8:
            return 8, 128
        tm = _round_up(max(tm // 2, 8), 8)


# ----------------------------------------------------------------------------
# Parameter preparation (call once; hoists padding + dtype cast off the hot path)
# ----------------------------------------------------------------------------
def prepare_ffn_params(w1, b1, w2, b2, compute_dtype=jnp.bfloat16):
    """Pad weights to lane-dense sizes and cast to the MXU compute dtype.

    w1: [d_model, d_ff], b1: [d_ff], w2: [d_ff, d_model], b2: [d_model]
    (weights pre-transposed relative to PyTorch nn.Linear: y = x @ W + b).
    """
    d_model, d_ff = w1.shape
    d_model_p = _round_up(d_model, 128)
    d_ff_p = _round_up(d_ff, 512 if d_ff >= 512 else 128)
    w1p = jnp.zeros((d_model_p, d_ff_p), compute_dtype)
    w1p = w1p.at[:d_model, :d_ff].set(w1.astype(compute_dtype))
    w2p = jnp.zeros((d_ff_p, d_model_p), compute_dtype)
    w2p = w2p.at[:d_ff, :d_model].set(w2.astype(compute_dtype))
    b1p = jnp.zeros((1, d_ff_p), jnp.float32).at[0, :d_ff].set(
        b1.astype(jnp.float32))
    b2p = jnp.zeros((1, d_model_p), jnp.float32).at[0, :d_model].set(
        b2.astype(jnp.float32))
    return (w1p, b1p, w2p, b2p)


# ----------------------------------------------------------------------------
# Forward pass
# ----------------------------------------------------------------------------
@jax.jit
def _ffn_apply(x, w1p, b1p, w2p, b2p):
    *lead, d_model = x.shape
    d_model_p, d_ff_p = w1p.shape
    N = 1
    for s in lead:
        N *= s

    xbytes = x.dtype.itemsize
    wbytes = w1p.dtype.itemsize
    budget = _vmem_budget_bytes()
    tm, tk = _choose_tiles(N, d_model_p, d_ff_p, xbytes, wbytes, budget)
    n_p = _round_up(N, tm)

    x2d = x.reshape(N, d_model)
    if (n_p, d_model_p) != (N, d_model):
        x2d = jnp.zeros((n_p, d_model_p), x.dtype).at[:N, :d_model].set(x2d)

    n_i, n_k = n_p // tm, d_ff_p // tk
    # Weights are DMA'd once when VMEM-resident (n_k == 1, constant block
    # index), otherwise re-streamed once per row tile.
    w_stream = 1 if n_k == 1 else n_i
    cost = pl.CostEstimate(
        flops=4 * N * d_model_p * d_ff_p,
        transcendentals=0,
        bytes_accessed=(2 * n_p * d_model_p * xbytes
                        + w_stream * 2 * d_model_p * d_ff_p * wbytes
                        + n_i * n_k * (d_ff_p + d_model_p) * 4))

    out2d = pl.pallas_call(
        _ffn_kernel,
        out_shape=jax.ShapeDtypeStruct((n_p, d_model_p), x.dtype),
        grid_spec=pltpu.PrefetchScalarGridSpec(
            num_scalar_prefetch=0,
            grid=(n_i, n_k),
            in_specs=[
                pl.BlockSpec((tm, d_model_p), lambda i, k: (i, 0)),   # x tile
                pl.BlockSpec((d_model_p, tk), lambda i, k: (0, k)),   # W1 block
                pl.BlockSpec((1, tk), lambda i, k: (0, k)),           # b1 block
                pl.BlockSpec((tk, d_model_p), lambda i, k: (k, 0)),   # W2 block
                pl.BlockSpec((1, d_model_p), lambda i, k: (0, 0)),    # b2
            ],
            out_specs=pl.BlockSpec((tm, d_model_p), lambda i, k: (i, 0)),
            scratch_shapes=[pltpu.VMEM((tm, d_model_p), jnp.float32)],
        ),
        compiler_params=pltpu.CompilerParams(
            dimension_semantics=("parallel", "arbitrary"),
            vmem_limit_bytes=int(budget)),
        cost_estimate=cost,
    )(x2d, w1p, b1p, w2p, b2p)

    return out2d[:N, :d_model].reshape(*lead, d_model)


def feed_forward_network(x, params):
    """x: [..., d_model] -> [..., d_model]; params from prepare_ffn_params."""
    return _ffn_apply(x, *params)


# ----------------------------------------------------------------------------
# Test harness
# ----------------------------------------------------------------------------
def _init_params(key, d_model, d_ff, dtype=jnp.float32):
    """Deterministic PyTorch-Linear-style init (uniform +/- 1/sqrt(fan_in))."""
    k1, k2, k3, k4 = jax.random.split(key, 4)
    lim1 = 1.0 / (d_model ** 0.5)
    lim2 = 1.0 / (d_ff ** 0.5)
    # Stored transposed vs. PyTorch: W1 is [d_model, d_ff], W2 is [d_ff, d_model]
    w1 = jax.random.uniform(k1, (d_model, d_ff), dtype, -lim1, lim1)
    b1 = jax.random.uniform(k2, (d_ff,), dtype, -lim1, lim1)
    w2 = jax.random.uniform(k3, (d_ff, d_model), dtype, -lim2, lim2)
    b2 = jax.random.uniform(k4, (d_model,), dtype, -lim2, lim2)
    return w1, b1, w2, b2


def _ref(x, w1, b1, w2, b2, compute_dtype=jnp.float32):
    """Reference matching the kernel's mixed-precision numerics."""
    f32 = jnp.float32
    xc = x.astype(compute_dtype).astype(f32)
    w1c = w1.astype(compute_dtype).astype(f32)
    w2c = w2.astype(compute_dtype).astype(f32)
    h = jnp.maximum(xc @ w1c + b1.astype(f32), 0.0)
    h = h.astype(compute_dtype).astype(f32)
    return h @ w2c + b2.astype(f32)


if __name__ == "__main__":
    key = jax.random.PRNGKey(0)

    # Case 1: small aligned dims, bf16 MXU datapath (default).
    B, S, d_model, d_ff = 2, 8, 32, 64
    kx, kp, key = jax.random.split(key, 3)
    x = jax.random.normal(kx, (B, S, d_model), dtype=jnp.float32)
    w1, b1, w2, b2 = _init_params(kp, d_model, d_ff)
    params = prepare_ffn_params(w1, b1, w2, b2, compute_dtype=jnp.bfloat16)
    out = jax.block_until_ready(feed_forward_network(x, params))
    assert out.shape == (B, S, d_model)
    assert jnp.allclose(out, _ref(x, w1, b1, w2, b2, jnp.bfloat16),
                        atol=1e-2, rtol=1e-2), "case 1 mismatch"

    # Case 2: odd, non-aligned dims (row / lane / d_ff padding), bf16 weights.
    B, S, d_model, d_ff = 1, 5, 48, 200
    kx, kp, key = jax.random.split(key, 3)
    x = jax.random.normal(kx, (B, S, d_model), dtype=jnp.float32)
    w1, b1, w2, b2 = _init_params(kp, d_model, d_ff)
    params = prepare_ffn_params(w1, b1, w2, b2, compute_dtype=jnp.bfloat16)
    out = jax.block_until_ready(feed_forward_network(x, params))
    assert out.shape == (B, S, d_model)
    assert jnp.allclose(out, _ref(x, w1, b1, w2, b2, jnp.bfloat16),
                        atol=1e-2, rtol=1e-2), "case 2 mismatch"

    # Case 3: f32 compute dtype, tight tolerance vs exact reference.
    B, S, d_model, d_ff = 2, 16, 64, 128
    kx, kp, key = jax.random.split(key, 3)
    x = jax.random.normal(kx, (B, S, d_model), dtype=jnp.float32)
    w1, b1, w2, b2 = _init_params(kp, d_model, d_ff)
    params = prepare_ffn_params(w1, b1, w2, b2, compute_dtype=jnp.float32)
    out = jax.block_until_ready(feed_forward_network(x, params))
    assert out.shape == (B, S, d_model)
    assert jnp.allclose(out, _ref(x, w1, b1, w2, b2, jnp.float32),
                        atol=2e-3, rtol=2e-3), "case 3 mismatch"

    print("KERNEL_OK")
</pallas_src>

<mosaic_0001>
module attributes {stable_mosaic.version = 11 : i64} {
  func.func @_ffn_kernel(%arg0: i32, %arg1: i32, %arg2: memref<8x128xf32, #tpu.memory_space<vmem>>, %arg3: memref<128x128xbf16, #tpu.memory_space<vmem>>, %arg4: memref<1x128xf32, #tpu.memory_space<vmem>>, %arg5: memref<128x128xbf16, #tpu.memory_space<vmem>>, %arg6: memref<1x128xf32, #tpu.memory_space<vmem>>, %arg7: memref<8x128xf32, #tpu.memory_space<vmem>>, %arg8: memref<8x128xf32, #tpu.memory_space<vmem>>) attributes {dimension_semantics = [#tpu.dimension_semantics<parallel>, #tpu.dimension_semantics<arbitrary>], iteration_bounds = array<i64: 2, 1>, scalar_prefetch = 0 : i64, scratch_operands = 1 : i64, tpu.core_type = #tpu.core_type<tc>, window_params = [{transform_indices = @transform_0, window_bounds = array<i64: 8, 128>}, {transform_indices = @transform_1, window_bounds = array<i64: 128, 128>}, {transform_indices = @transform_2, window_bounds = array<i64: 1, 128>}, {transform_indices = @transform_3, window_bounds = array<i64: 128, 128>}, {pipeline_mode = #tpu.pipeline_mode<synchronous>, transform_indices = @transform_4, window_bounds = array<i64: 1, 128>}, {transform_indices = @transform_5, window_bounds = array<i64: 8, 128>}]} {
    %c0_i32 = arith.constant 0 : i32
    %0 = arith.cmpi eq, %arg1, %c0_i32 : i32
    %1 = arith.extui %0 : i1 to i32
    %c0_i32_0 = arith.constant 0 : i32
    %2 = arith.cmpi ne, %1, %c0_i32_0 : i32
    scf.if %2 {
      %c0_16 = arith.constant 0 : index
      %c0_17 = arith.constant 0 : index
      %21 = vector.load %arg6[%c0_16, %c0_17] : memref<1x128xf32, #tpu.memory_space<vmem>>, vector<1x128xf32>
      %22 = vector.shape_cast %21 : vector<1x128xf32> to vector<1x128xf32>
      %23 = vector.broadcast %22 : vector<1x128xf32> to vector<8x128xf32>
      %c0_18 = arith.constant 0 : index
      %c0_19 = arith.constant 0 : index
      %24 = vector.load %arg8[%c0_18, %c0_19] : memref<8x128xf32, #tpu.memory_space<vmem>>, vector<8x128xf32>
      tpu.vector_store %arg8[%c0_18, %c0_19], %23 {strides = array<i32>} : memref<8x128xf32, #tpu.memory_space<vmem>>, vector<8x128xf32>,
    } else {
    }
    %c0 = arith.constant 0 : index
    %c0_1 = arith.constant 0 : index
    %3 = vector.load %arg2[%c0, %c0_1] : memref<8x128xf32, #tpu.memory_space<vmem>>, vector<8x128xf32>
    %4 = arith.truncf %3 : vector<8x128xf32> to vector<8x128xbf16>
    %c0_2 = arith.constant 0 : index
    %c0_3 = arith.constant 0 : index
    %5 = vector.load %arg3[%c0_2, %c0_3] : memref<128x128xbf16, #tpu.memory_space<vmem>>, vector<128x128xbf16>
    %cst = arith.constant dense<0.000000e+00> : vector<8x128xf32>
    %6 = tpu.matmul %4, %5, %cst {dimension_numbers = #tpu.dot_dimension_numbers<[1], [0], [0], [1], [0, 0, 1, 1], [], []>} : vector<8x128xbf16>, vector<128x128xbf16>, vector<8x128xf32> -> vector<8x128xf32>
    %c0_4 = arith.constant 0 : index
    %c0_5 = arith.constant 0 : index
    %7 = vector.load %arg4[%c0_4, %c0_5] : memref<1x128xf32, #tpu.memory_space<vmem>>, vector<1x128xf32>
    %8 = vector.broadcast %7 : vector<1x128xf32> to vector<8x128xf32>
    %9 = arith.addf %6, %8 : vector<8x128xf32>
    %cst_6 = arith.constant 0.000000e+00 : f32
    %10 = vector.broadcast %cst_6 : f32 to vector<8x128xf32>
    %11 = arith.maximumf %9, %10 : vector<8x128xf32>
    %c0_7 = arith.constant 0 : index
    %c0_8 = arith.constant 0 : index
    %12 = vector.load %arg8[%c0_7, %c0_8] : memref<8x128xf32, #tpu.memory_space<vmem>>, vector<8x128xf32>
    %13 = arith.truncf %11 : vector<8x128xf32> to vector<8x128xbf16>
    %c0_9 = arith.constant 0 : index
    %c0_10 = arith.constant 0 : index
    %14 = vector.load %arg5[%c0_9, %c0_10] : memref<128x128xbf16, #tpu.memory_space<vmem>>, vector<128x128xbf16>
    %cst_11 = arith.constant dense<0.000000e+00> : vector<8x128xf32>
    %15 = tpu.matmul %13, %14, %cst_11 {dimension_numbers = #tpu.dot_dimension_numbers<[1], [0], [0], [1], [0, 0, 1, 1], [], []>} : vector<8x128xbf16>, vector<128x128xbf16>, vector<8x128xf32> -> vector<8x128xf32>
    %16 = arith.addf %12, %15 : vector<8x128xf32>
    %c0_12 = arith.constant 0 : index
    %c0_13 = arith.constant 0 : index
    %17 = vector.load %arg8[%c0_12, %c0_13] : memref<8x128xf32, #tpu.memory_space<vmem>>, vector<8x128xf32>
    tpu.vector_store %arg8[%c0_12, %c0_13], %16 {strides = array<i32>} : memref<8x128xf32, #tpu.memory_space<vmem>>, vector<8x128xf32>,
    %c0_i32_14 = arith.constant 0 : i32
    %18 = arith.cmpi eq, %arg1, %c0_i32_14 : i32
    %19 = arith.extui %18 : i1 to i32
    %c0_i32_15 = arith.constant 0 : i32
    %20 = arith.cmpi ne, %19, %c0_i32_15 : i32
    scf.if %20 {
      %c0_16 = arith.constant 0 : index
      %c0_17 = arith.constant 0 : index
      %21 = vector.load %arg8[%c0_16, %c0_17] : memref<8x128xf32, #tpu.memory_space<vmem>>, vector<8x128xf32>
      %c0_18 = arith.constant 0 : index
      %c0_19 = arith.constant 0 : index
      %22 = vector.load %arg7[%c0_18, %c0_19] : memref<8x128xf32, #tpu.memory_space<vmem>>, vector<8x128xf32>
      tpu.vector_store %arg7[%c0_18, %c0_19], %21 {strides = array<i32>} : memref<8x128xf32, #tpu.memory_space<vmem>>, vector<8x128xf32>,
    } else {
    }
    return
  }
  func.func @transform_0(%arg0: i32, %arg1: i32) -> (i32, i32) {
    %c0_i32 = arith.constant 0 : i32
    %c0_i32_0 = arith.constant 0 : i32
    return %arg0, %c0_i32 : i32, i32
  }
  func.func @transform_1(%arg0: i32, %arg1: i32) -> (i32, i32) {
    %c0_i32 = arith.constant 0 : i32
    %c0_i32_0 = arith.constant 0 : i32
    return %c0_i32, %arg1 : i32, i32
  }
  func.func @transform_2(%arg0: i32, %arg1: i32) -> (i32, i32) {
    %c0_i32 = arith.constant 0 : i32
    %c0_i32_0 = arith.constant 0 : i32
    return %c0_i32, %arg1 : i32, i32
  }
  func.func @transform_3(%arg0: i32, %arg1: i32) -> (i32, i32) {
    %c0_i32 = arith.constant 0 : i32
    %c0_i32_0 = arith.constant 0 : i32
    return %arg1, %c0_i32 : i32, i32
  }
  func.func @transform_4(%arg0: i32, %arg1: i32) -> (i32, i32) {
    %c0_i32 = arith.constant 0 : i32
    %c0_i32_0 = arith.constant 0 : i32
    %c0_i32_1 = arith.constant 0 : i32
    return %c0_i32, %c0_i32_0 : i32, i32
  }
  func.func @transform_5(%arg0: i32, %arg1: i32) -> (i32, i32) {
    %c0_i32 = arith.constant 0 : i32
    %c0_i32_0 = arith.constant 0 : i32
    return %arg0, %c0_i32 : i32, i32
  }
}

</mosaic_0001>

<bundles_post_ra>
// kernel: _ffn_apply.1
= control target key start
LH: loop header
LB: loop body
LE: loop exit
PB: predicated region body
PF: predicated region fallthrough
CT: control target
= control target key end

     0   :  { %10 = vsyncpa [#allocation4], 0  ;;  %s865_s18 = smov 0   ;;  %s867_s19 = smov 0   ;;  %s978_s0 = inlined_call_operand.vmem [shape: f32[16,128], index: 0, kind: input, shape index: {}]   ;;  %s979_s1 = inlined_call_operand.vmem [shape: bf16[128,128], index: 1, kind: input, shape index: {}]   ;;  %s980_s2 = inlined_call_operand.vmem [shape: f32[1,128], index: 2, kind: input, shape index: {}]   ;;  %s981_s3 = inlined_call_operand.hbm [shape: bf16[128,128], index: 3, kind: input, shape index: {}]   ;;  %s982_s4 = inlined_call_operand.vmem [shape: f32[1,128], index: 4, kind: input, shape index: {}]   ;;  %s983_s5 = inlined_call_operand.vmem [shape: f32[16,128], index: 5, kind: output, shape index: {}]  }
   0x1   :  { %s869_s20 = smov 0  }
   0x2 LB: > { %s630_s21 = sadd.s32 4294967295, %s828_s20   ;;  %s28_s22 = sadd.s32 1, %s824_s19  ;;  %s828_s20 = sphi %s869_s20, %s16_s20   ;;  %s824_s19 = sphi %s867_s19, %s993_s19   ;;  %s820_s18 = sphi %s865_s18, %s992_s18  }
   0x3   : > { %p30_p0 = scmp.ge.s32.totalorder %s28_s22, 2  ;;  %p632_p1 = scmp.ge.s32.totalorder %s828_s20, 1 }
   0x4   : > { %p184_p2 = scmp.lt.s32.totalorder %s828_s20, 3  ;;  %p890_p4 = scmp.eq.s32.totalorder %s630_s21, 0 }
   0x5   : > { %s995_s22 = smov (%p30_p0, %s28_s22), 0  ;;  %s830_s25 = smov [#allocation3]  }
   0x6   : > { %p886_p3 = pnand %p632_p1, %p184_p2  ;;  %s212_s26 = sshll.u32 %s830_s25, 4  ;;  %s213_s26 = int_to_ptr.vmem [resolvable:$true] %s212_s26 }
   0x7   : > { %s988_s24 = scalar_select %p890_p4, 1, 0 }
   0x8   : > { %s987_s23 = scalar_select %p886_p3, 1, 0 }
   0x9   : > { %p723_p5 = pneg %p886_p3  ;;  %s774_s30 = scalar_lea.hbm %s981_s3, 1024 }
   0xa   : > { %p775_p7 = scmp.ne.s32.totalorder %s981_s3, %s774_s30  ;;  %p781_p11 = scmp.lt.u32.totalorder %s774_s30, %s981_s3 }
   0xb   : > { %p898_p6 = pnand %p890_p4, %p723_p5 }
   0xd   : > { %p776_p8 = pneg %p898_p6 }
   0xf   : > { %p777_p9 = pnand %p776_p8, %p775_p7 }
  0x11   : > { %p778_p10 = pneg %p777_p9 }
  0x13   : > { %p783_p12 = pnand %p781_p11, %p778_p10 }
  0x15   : > { %786 = shalt.err (!%p783_p12)
}
  0x16   : > { %s787_s10 = scalar_lea.vmem %s213_s26, 1024  ;;  %p795_p2 = scmp.lt.s32.totalorder %s213_s26, %s213_s26 }
  0x17   : > { %p788_p13 = scmp.ne.s32.totalorder %s213_s26, %s787_s10  ;;  %p796_p5 = scmp.lt.s32.totalorder %s787_s10, %s787_s10 }
  0x19   : > { %p790_p0 = pnand %p788_p13, %p776_p8  ;;  %p797_p4 = por %p796_p5, %p795_p2 }
  0x1b   : > { %p791_p1 = pneg %p790_p0 }
  0x1d   : > { %p798_p3 = pnand %p797_p4, %p791_p1 }
  0x1f   : > { %801 = shalt.err (!%p798_p3)
}
  0x20   : > { %s831_s11 = smov 64   ;;  %s832_s12 = smov 4  }
  0x21   : > { %726 = dma.hbm_to_vmem [thread:$0]  (!%p898_p6), %s981_s3, 1024, %s213_s26, [#allocation4], %s831_s11, %s831_s11, %s832_s12  }
  0x22   : > { %p990_p7 = scmp.ne.s32.totalorder %s987_s23, 0 }
  0x23   : > { %p991_p9 = scmp.ne.s32.totalorder (!%p990_p7), %s988_s24, 0 }
  0x24   : > { %238 = sbr.rel (%p990_p7) target bundleno = 511 (0x1ff), region = 40 }
  0x2b   : > { %815 = dma.done.wait (%p991_p9), [#allocation4], 1024  }
  0x2c   : > { %817 = vsyncadd (%p991_p9), [#allocation4], 4294966272  ;;  %v833_v0 = vmov 0.0   ;;  %vm834_vm0 = vmmov 0   ;;  %v758_v1 = vld [vmem:[%s979_s1] sm:$0xff]   ;;  %v759_v2 = vld [vmem:[%s979_s1 + $0x8] sm:$0xff]  }
  0x2d   : > { %679 = vmatprep.subr.bf16.mxu0 %v833_v0  ;;  %695 = vmatprep.mubr.msk.bf16.mxu0 %vm834_vm0, %v833_v0  ;;  %v760_v3 = vld [vmem:[%s979_s1 + $0x10] sm:$0xff]   ;;  %v766_v4 = vld [vmem:[#allocation3] sm:$0xff]   ;;  %v761_v5 = vld [vmem:[%s979_s1 + $0x18] sm:$0xff]   ;;  %p271_p3 = scmp.lt.s32.totalorder %s820_s18, 1 }
  0x2e   : > { %699 = vmatprep.subr.bf16.mxu1 %v833_v0  ;;  %715 = vmatprep.mubr.msk.bf16.mxu1 %vm834_vm0, %v833_v0  ;;  %v767_v6 = vld [vmem:[#allocation3 + $0x8] sm:$0xff]   ;;  %v762_v7 = vld [vmem:[%s979_s1 + $0x20] sm:$0xff]   ;;  %v768_v8 = vld [vmem:[#allocation3 + $0x10] sm:$0xff]  }
  0x2f   : > { %680 = vmatpush3.bf16.msra.mxu0 %v758_v1  ;;  %700 = vmatpush3.bf16.msra.mxu1 %v766_v4  ;;  %s997_s18 = smov (!%p271_p3, %s820_s18), 1  ;;  %v763_v9 = vld [vmem:[%s979_s1 + $0x28] sm:$0xff]   ;;  %v769_v10 = vld [vmem:[#allocation3 + $0x18] sm:$0xff]   ;;  %v764_v11 = vld [vmem:[%s979_s1 + $0x30] sm:$0xff]  }
  0x30   : > { %681 = vmatprep.subr.bf16.mxu0 %v833_v0  ;;  %701 = vmatprep.subr.bf16.mxu1 %v833_v0  ;;  %s639_s6 = sshll.u32 %s997_s18, 3  ;;  %v770_v12 = vld [vmem:[#allocation3 + $0x20] sm:$0xff]   ;;  %v765_v13 = vld [vmem:[%s979_s1 + $0x38] sm:$0xff]   ;;  %v771_v15 = vld [vmem:[#allocation3 + $0x28] sm:$0xff]  }
  0x31   : > { %s274_s11 = scalar_lea.vmem %s978_s0, %s639_s6  ;;  %v772_v17 = vld [vmem:[#allocation3 + $0x30] sm:$0xff]   ;;  %v773_v18 = vld [vmem:[#allocation3 + $0x38] sm:$0xff]   ;;  %v642_v19 = vld [vmem:[%s980_s2] ss:$0 sm:$0xff]  ;;  %s286_s24 = scalar_lea.vmem %s983_s5, %s639_s6 }
  0x32   : > { %v300_v14 = vld [vmem:[%s274_s11] sm:$0xff] }
  0x33   : > { %682 = vmatpush3.bf16.msra.mxu0 %v759_v2  ;;  %702 = vmatpush3.bf16.msra.mxu1 %v767_v6  ;;  %v301_v16 = vpack.c.bf16 %v300_v14, %v300_v14  ;;  %v641_v27 = vld [vmem:[%s982_s4] ss:$0 sm:$0xff] }
  0x34   : > { %683 = vmatprep.subr.bf16.mxu0 %v833_v0  ;;  %703 = vmatprep.subr.bf16.mxu1 %v833_v0 }
  0x37   : > { %684 = vmatpush3.bf16.msra.mxu0 %v760_v3  ;;  %704 = vmatpush3.bf16.msra.mxu1 %v768_v8 }
  0x38   : > { %685 = vmatprep.subr.bf16.mxu0 %v833_v0  ;;  %705 = vmatprep.subr.bf16.mxu1 %v833_v0 }
  0x3b   : > { %686 = vmatpush3.bf16.msra.mxu0 %v761_v5  ;;  %706 = vmatpush3.bf16.msra.mxu1 %v769_v10 }
  0x3c   : > { %687 = vmatprep.subr.bf16.mxu0 %v833_v0  ;;  %707 = vmatprep.subr.bf16.mxu1 %v833_v0 }
  0x3f   : > { %688 = vmatpush3.bf16.msra.mxu0 %v762_v7  ;;  %708 = vmatpush3.bf16.msra.mxu1 %v770_v12 }
  0x40   : > { %689 = vmatprep.subr.bf16.mxu0 %v833_v0  ;;  %709 = vmatprep.subr.bf16.mxu1 %v833_v0 }
  0x43   : > { %690 = vmatpush3.bf16.msra.mxu0 %v763_v9  ;;  %710 = vmatpush3.bf16.msra.mxu1 %v771_v15 }
  0x44   : > { %691 = vmatprep.subr.bf16.mxu0 %v833_v0  ;;  %711 = vmatprep.subr.bf16.mxu1 %v833_v0 }
  0x47   : > { %692 = vmatpush3.bf16.msra.mxu0 %v764_v11  ;;  %712 = vmatpush3.bf16.msra.mxu1 %v772_v17 }
  0x48   : > { %693 = vmatprep.subr.bf16.mxu0 %v833_v0  ;;  %713 = vmatprep.subr.bf16.mxu1 %v833_v0 }
  0x4b   : > { %694 = vmatpush3.bf16.msra.mxu0 %v765_v13  ;;  %714 = vmatpush3.bf16.msra.mxu1 %v773_v18 }
  0x4e   : > { %696 = vmatmul.mubr.bf16.vlgmr.msra.gmra.mrb[0].mxu0 %v301_v16 }
 0x121   : > { %v407_v20 = vpop.f32.mrb[0].mxu0 }
 0x122   : > { %v408_v21 = vadd.f32 %v642_v19, %v407_v20  ;;  %v697_v22 = vpop.f32.mrb[1].mxu0 }
 0x123   : > { %v410_v23 = vpop.f32.mrb[2].mxu0 }
 0x124   : > { %v413_v24 = vmax.f32 %v408_v21, 0.0  ;;  %v698_v25 = vpop.f32.mrb[3].mxu0 }
 0x126   : > { %v415_v26 = vpack.c.bf16 %v413_v24, %v413_v24 }
 0x128   : > { %716 = vmatmul.mubr.bf16.vlgmr.msra.gmra.mrb[0].mxu1 %v415_v26 }
 0x1fb   : > { %v514_v28 = vpop.f32.mrb[0].mxu1 }
 0x1fc   : > { %v520_v29 = vadd.f32 %v641_v27, %v514_v28  ;;  %v717_v30 = vpop.f32.mrb[1].mxu1 }
 0x1fd   : > { %v517_v31 = vpop.f32.mrb[2].mxu1 }
 0x1fe   : > { %526 = vst [vmem:[%s286_s24] sm:$0xff] %v520_v29  ;;  %v718_v32 = vpop.f32.mrb[3].mxu1 }
 0x1ff PF: > { %s16_s20 = sadd.s32 1, %s828_s20   ;;  %s992_s18 = smov %s824_s19 }
 0x200   : > { %p13_p4 = scmp.ge.s32.totalorder %s16_s20, 4   ;;  %s993_s19 = smov %s995_s22 }
 0x202   :  { %15 = sbr.rel (!%p13_p4) target bundleno = 2 (0x2), region = 90 }
 0x209   :  { %546 = vsyncpa [#allocation4], 1 }
 0x20a   :  { %548 = vsyncpa [#allocation4 + $0x1], 1 }

</bundles_post_ra>
